<compile_context>
chip_gen: v5e
topology: v5e:2x2
jax: 0.10.0
libtpu: 0.0.40
codegen_flags: <defaults>
</compile_context>

<pallas_src>
import jax
import jax.numpy as jnp
from jax.experimental import pallas as pl
from jax.experimental.pallas import tpu as pltpu

# ---- problem sizes (KarateClub: 34 nodes, 34 features, 4 classes) ----------
N_NODES = 34
N_FEATURES = 34
N_CLASSES = 4
H1, H2, H3 = 64, 32, 16
N_EDGES = 60          # synthetic random undirected graph

# ---- padded layout ----------------------------------------------------------
N_PAD = 40            # nodes: 34 -> 40 (multiple of 8, f32 sublane tile)
LANE = 128            # fan_out / lane dim
F_PAD = 48            # input features: 34 -> 48 (multiple of 16, bf16 sublane tile)

# row offsets inside the stacked weight buffer (all multiples of 16)
W1_OFF, W1_ROWS = 0, F_PAD      # (48,128), valid (34, 64)
W2_OFF, W2_ROWS = 48, H1        # (64,128), valid (64, 32)
W3_OFF, W3_ROWS = 112, H2       # (32,128), valid (32, 16)
WC_OFF, WC_ROWS = 144, H3       # (16,128), valid (16,  4)
W_STACK_ROWS = 160


# ---------------------------- Pallas kernel ---------------------------------
def gcn_forward_kernel(a_ref, x_ref, w_ref, b_ref, o_ref):
    """Fused GCN forward: 3x relu(A_hat @ (H @ W) + b) + linear classifier."""
    a = a_ref[...]          # (40, 40)  f32 normalized adjacency
    b = b_ref[...]          # (8, 128)  f32, rows 0..3 = b1, b2, b3, bc

    # --- GCNConv 1 + ReLU ---
    h = x_ref[...]                                                   # (40,48) bf16
    z = jnp.dot(h, w_ref[pl.ds(W1_OFF, W1_ROWS), :],
                preferred_element_type=jnp.float32)                  # (40,128) f32
    z = jnp.dot(a, z, preferred_element_type=jnp.float32) + b[0:1, :]
    h = jnp.maximum(z, 0.0)

    # --- GCNConv 2 + ReLU ---
    z = jnp.dot(h[:, :H1].astype(jnp.bfloat16),
                w_ref[pl.ds(W2_OFF, W2_ROWS), :],
                preferred_element_type=jnp.float32)
    z = jnp.dot(a, z, preferred_element_type=jnp.float32) + b[1:2, :]
    h = jnp.maximum(z, 0.0)

    # --- GCNConv 3 + ReLU ---
    z = jnp.dot(h[:, :H2].astype(jnp.bfloat16),
                w_ref[pl.ds(W3_OFF, W3_ROWS), :],
                preferred_element_type=jnp.float32)
    z = jnp.dot(a, z, preferred_element_type=jnp.float32) + b[2:3, :]
    h = jnp.maximum(z, 0.0)

    # --- Linear classifier ---
    o_ref[...] = (jnp.dot(h[:, :H3].astype(jnp.bfloat16),
                          w_ref[pl.ds(WC_OFF, WC_ROWS), :],
                          preferred_element_type=jnp.float32) + b[3:4, :])


# ------------------------------ glue / wrapper -------------------------------
def _pad2(x, rows, cols, dtype):
    out = jnp.zeros((rows, cols), dtype)
    return out.at[: x.shape[0], : x.shape[1]].set(x.astype(dtype))


def normalized_adjacency(edge_index, num_nodes):
    """Dense D^-1/2 (A + I) D^-1/2  (PyG GCNConv gcn_norm semantics)."""
    src, dst = edge_index[0], edge_index[1]
    a = jnp.zeros((num_nodes, num_nodes), jnp.float32)
    a = a.at[src, dst].set(1.0)
    a = a.at[dst, src].set(1.0)              # undirected
    eye = jnp.eye(num_nodes, dtype=jnp.float32)
    a = a * (1.0 - eye) + eye                # add self loops exactly once
    deg = a.sum(axis=1)
    dinv = jax.lax.rsqrt(deg)
    return dinv[:, None] * a * dinv[None, :]


def prepare_inputs(x, edge_index, params):
    """One-time preprocessing, hoisted out of the per-inference hot path."""
    a_p = _pad2(normalized_adjacency(edge_index, x.shape[0]),
                N_PAD, N_PAD, jnp.float32)
    x_p = _pad2(x, N_PAD, F_PAD, jnp.bfloat16)

    # Stack all four weights (bf16) into one lane-dense buffer.
    w_stack = jnp.zeros((W_STACK_ROWS, LANE), jnp.bfloat16)
    for off, w in ((W1_OFF, params["w1"]), (W2_OFF, params["w2"]),
                   (W3_OFF, params["w3"]), (WC_OFF, params["wc"])):
        w_stack = w_stack.at[off:off + w.shape[0], : w.shape[1]].set(
            w.astype(jnp.bfloat16))

    # Stack all four biases (f32) into one (8,128) buffer.
    b_stack = jnp.zeros((8, LANE), jnp.float32)
    for i, name in enumerate(("b1", "b2", "b3", "bc")):
        bvec = params[name]
        b_stack = b_stack.at[i, : bvec.shape[0]].set(bvec.astype(jnp.float32))

    return a_p, x_p, w_stack, b_stack


# advisory scheduling hints for the sub-microsecond custom call
_FLOPS = 2 * N_PAD * LANE * (F_PAD + W2_ROWS + W3_ROWS + WC_ROWS + 3 * N_PAD)
_BYTES = (N_PAD * N_PAD * 4 + N_PAD * F_PAD * 2 + W_STACK_ROWS * LANE * 2
          + 8 * LANE * 4 + N_PAD * LANE * 4)


@jax.jit
def gcn_forward(a_p, x_p, w_stack, b_stack):
    out_padded = pl.pallas_call(
        gcn_forward_kernel,
        out_shape=jax.ShapeDtypeStruct((N_PAD, LANE), jnp.float32),
        in_specs=[pl.BlockSpec(memory_space=pltpu.MemorySpace.VMEM)] * 4,
        out_specs=pl.BlockSpec(memory_space=pltpu.MemorySpace.VMEM),
        cost_estimate=pl.CostEstimate(flops=_FLOPS, transcendentals=0,
                                      bytes_accessed=_BYTES),
    )(a_p, x_p, w_stack, b_stack)
    return out_padded[:N_NODES, :N_CLASSES]


def reference_forward(x, edge_index, params):
    a_hat = normalized_adjacency(edge_index, x.shape[0])
    h = x.astype(jnp.float32)
    h = jnp.maximum(a_hat @ (h @ params["w1"]) + params["b1"], 0.0)
    h = jnp.maximum(a_hat @ (h @ params["w2"]) + params["b2"], 0.0)
    h = jnp.maximum(a_hat @ (h @ params["w3"]) + params["b3"], 0.0)
    return h @ params["wc"] + params["bc"]


def init_params(key):
    def glorot(k, fan_in, fan_out):
        lim = (6.0 / (fan_in + fan_out)) ** 0.5
        return jax.random.uniform(k, (fan_in, fan_out), jnp.float32, -lim, lim)

    k1, k2, k3, k4 = jax.random.split(key, 4)
    return {
        "w1": glorot(k1, N_FEATURES, H1), "b1": jnp.zeros((H1,), jnp.float32),
        "w2": glorot(k2, H1, H2),         "b2": jnp.zeros((H2,), jnp.float32),
        "w3": glorot(k3, H2, H3),         "b3": jnp.zeros((H3,), jnp.float32),
        "wc": glorot(k4, H3, N_CLASSES),  "bc": jnp.zeros((N_CLASSES,), jnp.float32),
    }


if __name__ == "__main__":
    key = jax.random.PRNGKey(0)
    k_x, k_e, k_p = jax.random.split(key, 3)

    # KarateClub features are a one-hot identity; use it (deterministic).
    x = jnp.eye(N_NODES, N_FEATURES, dtype=jnp.float32)

    # Synthetic deterministic undirected edge list (no self loops).
    src = jax.random.randint(k_e, (N_EDGES,), 0, N_NODES)
    dst = (src + 1 + jax.random.randint(jax.random.fold_in(k_e, 1),
                                        (N_EDGES,), 0, N_NODES - 1)) % N_NODES
    edge_index = jnp.stack([src, dst], axis=0)  # (2, N_EDGES)

    params = init_params(k_p)

    # One-time preprocessing (adjacency normalization + padding/packing).
    a_p, x_p, w_stack, b_stack = prepare_inputs(x, edge_index, params)

    out = gcn_forward(a_p, x_p, w_stack, b_stack)
    out = jax.block_until_ready(out)

    ref = reference_forward(x, edge_index, params)
    assert out.shape == (N_NODES, N_CLASSES)
    # bf16 weights/activations (f32 accumulation) vs pure-f32 reference:
    # relaxed tolerance per the review's guidance.
    assert jnp.allclose(out, ref, atol=2e-2, rtol=2e-2)

    print("KERNEL_OK")
</pallas_src>

<mosaic_0001>
module attributes {stable_mosaic.version = 11 : i64} {
  func.func @gcn_forward_kernel(%arg0: memref<40x40xf32, #tpu.memory_space<vmem>>, %arg1: memref<40x48xbf16, #tpu.memory_space<vmem>>, %arg2: memref<160x128xbf16, #tpu.memory_space<vmem>>, %arg3: memref<8x128xf32, #tpu.memory_space<vmem>>, %arg4: memref<40x128xf32, #tpu.memory_space<vmem>>) attributes {dimension_semantics = [], scalar_prefetch = 0 : i64, scratch_operands = 0 : i64, tpu.core_type = #tpu.core_type<tc>} {
    %c0 = arith.constant 0 : index
    %c0_0 = arith.constant 0 : index
    %0 = vector.load %arg0[%c0, %c0_0] : memref<40x40xf32, #tpu.memory_space<vmem>>, vector<40x40xf32>
    %c0_1 = arith.constant 0 : index
    %c0_2 = arith.constant 0 : index
    %1 = vector.load %arg3[%c0_1, %c0_2] : memref<8x128xf32, #tpu.memory_space<vmem>>, vector<8x128xf32>
    %c0_3 = arith.constant 0 : index
    %c0_4 = arith.constant 0 : index
    %2 = vector.load %arg1[%c0_3, %c0_4] : memref<40x48xbf16, #tpu.memory_space<vmem>>, vector<40x48xbf16>
    %c0_5 = arith.constant 0 : index
    %c0_6 = arith.constant 0 : index
    %3 = vector.load %arg2[%c0_5, %c0_6] : memref<160x128xbf16, #tpu.memory_space<vmem>>, vector<48x128xbf16>
    %cst = arith.constant dense<0.000000e+00> : vector<40x128xf32>
    %4 = tpu.matmul %2, %3, %cst {dimension_numbers = #tpu.dot_dimension_numbers<[1], [0], [0], [1], [0, 0, 1, 1], [], []>} : vector<40x48xbf16>, vector<48x128xbf16>, vector<40x128xf32> -> vector<40x128xf32>
    %cst_7 = arith.constant dense<0.000000e+00> : vector<40x128xf32>
    %5 = tpu.matmul %0, %4, %cst_7 {dimension_numbers = #tpu.dot_dimension_numbers<[1], [0], [0], [1], [0, 0, 1, 1], [], []>} : vector<40x40xf32>, vector<40x128xf32>, vector<40x128xf32> -> vector<40x128xf32>
    %6 = vector.extract_strided_slice %1 {offsets = [0, 0], sizes = [1, 128], strides = [1, 1]} : vector<8x128xf32> to vector<1x128xf32>
    %7 = vector.broadcast %6 : vector<1x128xf32> to vector<40x128xf32>
    %8 = arith.addf %5, %7 : vector<40x128xf32>
    %cst_8 = arith.constant 0.000000e+00 : f32
    %9 = vector.broadcast %cst_8 : f32 to vector<40x128xf32>
    %10 = arith.maximumf %8, %9 : vector<40x128xf32>
    %11 = vector.extract_strided_slice %10 {offsets = [0, 0], sizes = [40, 64], strides = [1, 1]} : vector<40x128xf32> to vector<40x64xf32>
    %12 = arith.truncf %11 : vector<40x64xf32> to vector<40x64xbf16>
    %c48 = arith.constant 48 : index
    %c0_9 = arith.constant 0 : index
    %13 = vector.load %arg2[%c48, %c0_9] : memref<160x128xbf16, #tpu.memory_space<vmem>>, vector<64x128xbf16>
    %cst_10 = arith.constant dense<0.000000e+00> : vector<40x128xf32>
    %14 = tpu.matmul %12, %13, %cst_10 {dimension_numbers = #tpu.dot_dimension_numbers<[1], [0], [0], [1], [0, 0, 1, 1], [], []>} : vector<40x64xbf16>, vector<64x128xbf16>, vector<40x128xf32> -> vector<40x128xf32>
    %cst_11 = arith.constant dense<0.000000e+00> : vector<40x128xf32>
    %15 = tpu.matmul %0, %14, %cst_11 {dimension_numbers = #tpu.dot_dimension_numbers<[1], [0], [0], [1], [0, 0, 1, 1], [], []>} : vector<40x40xf32>, vector<40x128xf32>, vector<40x128xf32> -> vector<40x128xf32>
    %16 = vector.extract_strided_slice %1 {offsets = [1, 0], sizes = [1, 128], strides = [1, 1]} : vector<8x128xf32> to vector<1x128xf32>
    %17 = vector.broadcast %16 : vector<1x128xf32> to vector<40x128xf32>
    %18 = arith.addf %15, %17 : vector<40x128xf32>
    %cst_12 = arith.constant 0.000000e+00 : f32
    %19 = vector.broadcast %cst_12 : f32 to vector<40x128xf32>
    %20 = arith.maximumf %18, %19 : vector<40x128xf32>
    %21 = vector.extract_strided_slice %20 {offsets = [0, 0], sizes = [40, 32], strides = [1, 1]} : vector<40x128xf32> to vector<40x32xf32>
    %22 = arith.truncf %21 : vector<40x32xf32> to vector<40x32xbf16>
    %c112 = arith.constant 112 : index
    %c0_13 = arith.constant 0 : index
    %23 = vector.load %arg2[%c112, %c0_13] : memref<160x128xbf16, #tpu.memory_space<vmem>>, vector<32x128xbf16>
    %cst_14 = arith.constant dense<0.000000e+00> : vector<40x128xf32>
    %24 = tpu.matmul %22, %23, %cst_14 {dimension_numbers = #tpu.dot_dimension_numbers<[1], [0], [0], [1], [0, 0, 1, 1], [], []>} : vector<40x32xbf16>, vector<32x128xbf16>, vector<40x128xf32> -> vector<40x128xf32>
    %cst_15 = arith.constant dense<0.000000e+00> : vector<40x128xf32>
    %25 = tpu.matmul %0, %24, %cst_15 {dimension_numbers = #tpu.dot_dimension_numbers<[1], [0], [0], [1], [0, 0, 1, 1], [], []>} : vector<40x40xf32>, vector<40x128xf32>, vector<40x128xf32> -> vector<40x128xf32>
    %26 = vector.extract_strided_slice %1 {offsets = [2, 0], sizes = [1, 128], strides = [1, 1]} : vector<8x128xf32> to vector<1x128xf32>
    %27 = vector.broadcast %26 : vector<1x128xf32> to vector<40x128xf32>
    %28 = arith.addf %25, %27 : vector<40x128xf32>
    %cst_16 = arith.constant 0.000000e+00 : f32
    %29 = vector.broadcast %cst_16 : f32 to vector<40x128xf32>
    %30 = arith.maximumf %28, %29 : vector<40x128xf32>
    %31 = vector.extract_strided_slice %30 {offsets = [0, 0], sizes = [40, 16], strides = [1, 1]} : vector<40x128xf32> to vector<40x16xf32>
    %32 = arith.truncf %31 : vector<40x16xf32> to vector<40x16xbf16>
    %c144 = arith.constant 144 : index
    %c0_17 = arith.constant 0 : index
    %33 = vector.load %arg2[%c144, %c0_17] : memref<160x128xbf16, #tpu.memory_space<vmem>>, vector<16x128xbf16>
    %cst_18 = arith.constant dense<0.000000e+00> : vector<40x128xf32>
    %34 = tpu.matmul %32, %33, %cst_18 {dimension_numbers = #tpu.dot_dimension_numbers<[1], [0], [0], [1], [0, 0, 1, 1], [], []>} : vector<40x16xbf16>, vector<16x128xbf16>, vector<40x128xf32> -> vector<40x128xf32>
    %35 = vector.extract_strided_slice %1 {offsets = [3, 0], sizes = [1, 128], strides = [1, 1]} : vector<8x128xf32> to vector<1x128xf32>
    %36 = vector.broadcast %35 : vector<1x128xf32> to vector<40x128xf32>
    %37 = arith.addf %34, %36 : vector<40x128xf32>
    %c0_19 = arith.constant 0 : index
    %c0_20 = arith.constant 0 : index
    %38 = vector.load %arg4[%c0_19, %c0_20] : memref<40x128xf32, #tpu.memory_space<vmem>>, vector<40x128xf32>
    tpu.vector_store %arg4[%c0_19, %c0_20], %37 {strides = array<i32>} : memref<40x128xf32, #tpu.memory_space<vmem>>, vector<40x128xf32>,
    return
  }
}

</mosaic_0001>

<bundles_post_ra>
// kernel: gcn_forward.1
= control target key start
LH: loop header
LB: loop body
LE: loop exit
PB: predicated region body
PF: predicated region fallthrough
CT: control target
= control target key end

     0   :  { %9 = vsyncpa [#allocation3], 0  ;;  %s778_s0 = inlined_call_operand.hbm [shape: f32[40,40], index: 0, kind: input, shape index: {}]   ;;  %s779_s1 = inlined_call_operand.hbm [shape: bf16[40,48], index: 1, kind: input, shape index: {}]   ;;  %s780_s2 = inlined_call_operand.hbm [shape: bf16[160,128], index: 2, kind: input, shape index: {}]   ;;  %s781_s3 = inlined_call_operand.hbm [shape: f32[8,128], index: 3, kind: input, shape index: {}]   ;;  %s782_s4 = inlined_call_operand.vmem [shape: f32[40,128], index: 4, kind: output, shape index: {}]  }
   0x1   :  { %10 = vsyncpa [#allocation5], 0  ;;  %s29_s17 = sshll.u32 %s779_s1, 4  ;;  %s30_s17 = int_to_ptr.hbm [resolvable:$true] %s29_s17 }
   0x2   :  { %11 = vsyncpa [#allocation8], 0  ;;  %s672_s18 = smov [#allocation4]   ;;  %s16_s22 = sshll.u32 %s778_s0, 4  ;;  %s17_s22 = int_to_ptr.hbm [resolvable:$true] %s16_s22 }
   0x3   :  { %s31_s19 = sshll.u32 %s672_s18, 4  ;;  %s673_s23 = smov 64   ;;  %s32_s19 = int_to_ptr.vmem [resolvable:$true] %s31_s19 }
   0x4   :  { %s674_s24 = smov 4   ;;  %s675_s25 = smov [#allocation2]  }
   0x5   :  { %37 = dma.hbm_to_vmem [thread:$0]  %s30_s17, 320, %s32_s19, [#allocation5], %s673_s23, %s673_s23, %s674_s24  }
   0x6   :  { %s18_s26 = sshll.u32 %s675_s25, 4  ;;  %s676_s27 = smov 128   ;;  %s19_s26 = int_to_ptr.vmem [resolvable:$true] %s18_s26 }
   0x7   :  { %s677_s28 = smov 8   ;;  %s42_s30 = sshll.u32 %s780_s2, 4  ;;  %s43_s30 = int_to_ptr.hbm [resolvable:$true] %s42_s30 }
   0x8   :  { %24 = dma.hbm_to_vmem [thread:$0]  %s17_s22, 640, %s19_s26, [#allocation3], %s676_s27, %s676_s27, %s677_s28  }
   0x9   :  { %s678_s5 = smov [#allocation6]   ;;  %s56_s8 = sshll.u32 %s781_s3, 4  ;;  %s57_s8 = int_to_ptr.hbm [resolvable:$true] %s56_s8 }
   0xa   :  { %s44_s6 = sshll.u32 %s678_s5, 4  ;;  %s679_s9 = smov [#allocation7]   ;;  %s45_s6 = int_to_ptr.vmem [resolvable:$true] %s44_s6 }
   0xb   :  { %50 = dma.hbm_to_vmem [thread:$0]  %s43_s30, 1280, %s45_s6, [#allocation5], %s673_s23, %s673_s23, %s674_s24  }
   0xc   :  { %s58_s10 = sshll.u32 %s679_s9, 4  ;;  %s59_s10 = int_to_ptr.vmem [resolvable:$true] %s58_s10 }
   0xd   :  { %61 = dma.hbm_to_vmem [thread:$0]  %s57_s8, 128, %s59_s10, [#allocation8]  }
   0xe   :  { %666 = dma.done.wait [#allocation3], 640  }
   0xf   :  { %667 = vsyncadd [#allocation3], 4294966656 }
  0x10   :  { %668 = dma.done.wait [#allocation5], 1600  }
  0x11   :  { %669 = vsyncadd [#allocation5], 4294965696 }
  0x12   :  { %670 = dma.done.wait [#allocation8], 128  }
  0x13   :  { %671 = vsyncadd [#allocation8], 4294967168  ;;  %v546_v0 = vld [vmem:[#allocation6 + $0x10] sm:$0xff]  ;;  %v545_v1 = vld [vmem:[#allocation6 + $0x8] sm:$0xff]  ;;  %vm127_vm0 = vcmask 392192   ;;  %vm161_vm1 = vcmask 326656  }
  0x14   :  { %554 = vmatpush.bf16.msra.mxu2 %v546_v0  ;;  %142 = vmatpush.bf16.msra.mxu0 %v546_v0  ;;  %v544_v2 = vld [vmem:[#allocation6] sm:$0xff]  ;;  %v543_v3 = vld [vmem:[#allocation4 + $0x8] sm:$0xff]  ;;  %v542_v4 = vld [vmem:[#allocation4] sm:$0xff]  ;;  %vm249_vm2 = vcmask 523264   ;;  %vm339_vm3 = vcmask 261120   ;;  %vm422_vm4 = vcmask 130048  }
  0x15   :  { %v89_v5 = vld [vmem:[#allocation4 + $0x10] sm:$0xf]  ;;  %v550_v12 = vld [vmem:[#allocation6 + $0x30] sm:$0xff]  ;;  %v549_v13 = vld [vmem:[#allocation6 + $0x28] sm:$0xff] }
  0x16   :  { %v105_v6 = vunpack.c.l.b16 %v89_v5  ;;  %v717_v15 = vld [vmem:[#allocation2] sm:$0xff]  ;;  %v719_v16 = vld [vmem:[#allocation2 + $0x8] sm:$0xff]  ;;  %v725_v18 = vld [vmem:[#allocation2 + $0x10] sm:$0xff] }
  0x17   :  { %v729_v19 = vld [vmem:[#allocation2 + $0x18] sm:$0xff]  ;;  %v733_v20 = vld [vmem:[#allocation2 + $0x20] sm:$0xff]  ;;  %v737_v23 = vld [vmem:[#allocation7] sm:$0xff] }
  0x18   :  { %555 = vmatpush.bf16.msra.mxu2 %v545_v1  ;;  %143 = vmatpush.bf16.msra.mxu0 %v545_v1  ;;  %v108_v7 = vpack.c.b16 %v105_v6, %v105_v6  ;;  %v548_v21 = vld [vmem:[#allocation6 + $0x20] sm:$0xff]  ;;  %v547_v22 = vld [vmem:[#allocation6 + $0x18] sm:$0xff]  ;;  %v160_v24 = vperm.slane %v737_v23, 0  ;;  %v282_v52 = vperm.slane %v737_v23, 1 }
  0x19   :  { %v552_v49 = vld [vmem:[#allocation6 + $0x40] sm:$0xff]  ;;  %v551_v50 = vld [vmem:[#allocation6 + $0x38] sm:$0xff] }
  0x1c   :  { %556 = vmatpush.bf16.msra.mxu2 %v544_v2  ;;  %144 = vmatpush.bf16.msra.mxu0 %v544_v2 }
  0x1f   :  { %488 = vmatmul.msk.bf16.vlgmr.msra.gmra.mxu2 %vm127_vm0, %v543_v3  ;;  %487 = vmatmul.msk.bf16.vlgmr.msra.gmra.mxu0 %vm127_vm0, %v542_v4 }
  0x20   :  { %263 = vmatpush.bf16.msrb.mxu2 %v550_v12  ;;  %v553_v12 = vld [vmem:[#allocation6 + $0x48] sm:$0xff] }
  0x24   :  { %264 = vmatpush.bf16.msrb.mxu2 %v549_v13 }
  0x28   :  { %265 = vmatpush.bf16.msrb.mxu2 %v548_v21 }
  0x2c   :  { %266 = vmatpush.bf16.msrb.mxu2 %v547_v22 }
  0x2f   :  { %489 = vmatmul.msk.bf16.gmra.mxu2 %vm127_vm0, %v108_v7 }
  0x9c   :  { %v146_v10 = vpop.f32.mrf.mxu0 }
  0xa2   :  { %v151_v8 = vpop.f32.mrf.mxu2 }
  0xa4   :  { %v148_v14 = vpop.f32.mrf.mxu0 }
  0xaa   :  { %v153_v9 = vpop.f32.mrf.mxu2 }
  0xb2   :  { %v156_v11 = vpop.f32.mrf.mxu2 }
  0xb3   :  { %188 = vmatpush.msrb.mxu0 %v156_v11  ;;  %557 = vmatpush.msra.mxu1 %v156_v11 }
  0xb5   :  { %189 = vmatpush.msrb.mxu0 %v153_v9  ;;  %558 = vmatpush.msra.mxu1 %v153_v9 }
  0xb7   :  { %190 = vmatpush.msrb.mxu0 %v151_v8  ;;  %559 = vmatpush.msra.mxu1 %v151_v8 }
  0xb9   :  { %191 = vmatpush.msrb.mxu0 %v148_v14  ;;  %560 = vmatpush.msra.mxu1 %v148_v14  ;;  %v372_v14 = vperm.slane %v737_v23, 2 }
  0xba   :  { %v158_v17 = vpop.f32.mrf.mxu2 }
  0xbb   :  { %192 = vmatpush.msrb.mxu0 %v146_v10  ;;  %561 = vmatpush.msra.mxu1 %v146_v10 }
  0xbc   :  { %490 = vmatmul.msk.f32.vlgmr.msrb.gmra.mxu0 %vm161_vm1, %v717_v15  ;;  %491 = vmatmul.msk.f32.vlgmr.msra.gmra.mxu1 %vm161_vm1, %v719_v16 }
  0xbd   :  { %355 = vmatpush.bf16.msrb.mxu1 %v552_v49  ;;  %439 = vmatpush.bf16.msra.mxu0 %v553_v12 }
  0xc1   :  { %356 = vmatpush.bf16.msrb.mxu1 %v551_v50 }
  0xc4   :  { %492 = vmatmul.msk.f32.gmra.mxu1 %vm161_vm1, %v725_v18 }
  0xcc   :  { %493 = vmatmul.msk.f32.gmra.mxu1 %vm161_vm1, %v729_v19 }
  0xd4   :  { %494 = vmatmul.msk.f32.gmra.mxu1 %vm161_vm1, %v733_v20 }
 0x139   :  { %v194_v25 = vpop.f32.mrf.mxu0  ;;  %v197_v26 = vpop.f32.mrf.mxu1 }
 0x13a   :  { %v195_v27 = vadd.f32 %v194_v25, %v160_v24  ;;  %v198_v28 = vadd.f32 %v197_v26, %v160_v24 }
 0x13c   :  { %v209_v29 = vmax.f32 %v195_v27, 0.0  ;;  %v210_v30 = vmax.f32 %v198_v28, 0.0 }
 0x13e   :  { %v214_v31 = vpack.c.bf16 %v210_v30, %v209_v29 }
 0x140   :  { %511 = vmatmul.msk.bf16.vlgmr.msrb.gmra.mxu2 %vm249_vm2, %v214_v31 }
 0x141   :  { %v200_v32 = vpop.f32.mrf.mxu1 }
 0x142   :  { %v201_v33 = vadd.f32 %v200_v32, %v160_v24 }
 0x144   :  { %v211_v36 = vmax.f32 %v201_v33, 0.0  ;;  %v415_v33 = vperm.slane %v737_v23, 3 }
 0x149   :  { %v203_v34 = vpop.f32.mrf.mxu1 }
 0x14a   :  { %v204_v35 = vadd.f32 %v203_v34, %v160_v24 }
 0x14c   :  { %v212_v37 = vmax.f32 %v204_v35, 0.0 }
 0x14e   :  { %v215_v38 = vpack.c.bf16 %v212_v37, %v211_v36 }
 0x150   :  { %512 = vmatmul.msk.bf16.gmra.mxu2 %vm249_vm2, %v215_v38 }
 0x151   :  { %v206_v39 = vpop.f32.mrf.mxu1 }
 0x152   :  { %v207_v40 = vadd.f32 %v206_v39, %v160_v24 }
 0x154   :  { %v213_v41 = vmax.f32 %v207_v40, 0.0 }
 0x156   :  { %v216_v42 = vpack.c.bf16 %v213_v41, %v213_v41 }
 0x160   :  { %513 = vmatmul.msk.bf16.gmra.mxu2 %vm249_vm2, %v216_v42 }
 0x1c3   :  { %v268_v43 = vpop.f32.mrf.mxu2 }
 0x1cb   :  { %v270_v44 = vpop.f32.mrf.mxu2 }
 0x1d3   :  { %v273_v45 = vpop.f32.mrf.mxu2 }
 0x1db   :  { %v275_v46 = vpop.f32.mrf.mxu2 }
 0x1e3   :  { %v278_v47 = vpop.f32.mrf.mxu2 }
 0x1e4   :  { %294 = vmatpush.msra.mxu3 %v278_v47 }
 0x1e6   :  { %295 = vmatpush.msra.mxu3 %v275_v46 }
 0x1e8   :  { %296 = vmatpush.msra.mxu3 %v273_v45 }
 0x1ea   :  { %297 = vmatpush.msra.mxu3 %v270_v44 }
 0x1eb   :  { %v280_v48 = vpop.f32.mrf.mxu2 }
 0x1ec   :  { %298 = vmatpush.msra.mxu3 %v268_v43 }
 0x1ed   :  { %514 = vmatmul.msk.f32.vlgmr.msra.gmra.mxu3 %vm161_vm1, %v717_v15 }
 0x1f5   :  { %515 = vmatmul.msk.f32.gmra.mxu3 %vm161_vm1, %v719_v16 }
 0x1fd   :  { %516 = vmatmul.msk.f32.gmra.mxu3 %vm161_vm1, %v725_v18 }
 0x205   :  { %517 = vmatmul.msk.f32.gmra.mxu3 %vm161_vm1, %v729_v19 }
 0x20d   :  { %518 = vmatmul.msk.f32.gmra.mxu3 %vm161_vm1, %v733_v20 }
 0x270   :  { %v300_v51 = vpop.f32.mrf.mxu3 }
 0x271   :  { %v301_v53 = vadd.f32 %v300_v51, %v282_v52 }
 0x273   :  { %v315_v56 = vmax.f32 %v301_v53, 0.0 }
 0x278   :  { %v303_v54 = vpop.f32.mrf.mxu3 }
 0x279   :  { %v304_v55 = vadd.f32 %v303_v54, %v282_v52 }
 0x27b   :  { %v316_v57 = vmax.f32 %v304_v55, 0.0 }
 0x27d   :  { %v320_v58 = vpack.c.bf16 %v316_v57, %v315_v56 }
 0x27f   :  { %527 = vmatmul.msk.bf16.vlgmr.msrb.gmra.mxu1 %vm339_vm3, %v320_v58 }
 0x280   :  { %v306_v59 = vpop.f32.mrf.mxu3 }
 0x281   :  { %v307_v60 = vadd.f32 %v306_v59, %v282_v52 }
 0x283   :  { %v317_v63 = vmax.f32 %v307_v60, 0.0 }
 0x288   :  { %v309_v61 = vpop.f32.mrf.mxu3 }
 0x289   :  { %v310_v62 = vadd.f32 %v309_v61, %v282_v52 }
 0x28b   :  { %v318_v0 = vmax.f32 %v310_v62, 0.0 }
 0x28d   :  { %v321_v1 = vpack.c.bf16 %v318_v0, %v317_v63 }
 0x28f   :  { %528 = vmatmul.msk.bf16.gmra.mxu1 %vm339_vm3, %v321_v1 }
 0x290   :  { %v312_v2 = vpop.f32.mrf.mxu3 }
 0x291   :  { %v313_v3 = vadd.f32 %v312_v2, %v282_v52 }
 0x293   :  { %v319_v4 = vmax.f32 %v313_v3, 0.0 }
 0x295   :  { %v322_v5 = vpack.c.bf16 %v319_v4, %v319_v4 }
 0x29f   :  { %529 = vmatmul.msk.bf16.gmra.mxu1 %vm339_vm3, %v322_v5 }
 0x2fc   :  { %v358_v6 = vpop.f32.mrf.mxu1 }
 0x304   :  { %v360_v7 = vpop.f32.mrf.mxu1 }
 0x30c   :  { %v363_v8 = vpop.f32.mrf.mxu1 }
 0x314   :  { %v365_v9 = vpop.f32.mrf.mxu1 }
 0x31c   :  { %v368_v10 = vpop.f32.mrf.mxu1 }
 0x31d   :  { %384 = vmatpush.msrb.mxu3 %v368_v10 }
 0x31f   :  { %385 = vmatpush.msrb.mxu3 %v365_v9 }
 0x321   :  { %386 = vmatpush.msrb.mxu3 %v363_v8 }
 0x323   :  { %387 = vmatpush.msrb.mxu3 %v360_v7 }
 0x324   :  { %v370_v11 = vpop.f32.mrf.mxu1 }
 0x325   :  { %388 = vmatpush.msrb.mxu3 %v358_v6 }
 0x326   :  { %530 = vmatmul.msk.f32.vlgmr.msrb.gmra.mxu3 %vm161_vm1, %v717_v15 }
 0x32e   :  { %531 = vmatmul.msk.f32.gmra.mxu3 %vm161_vm1, %v719_v16 }
 0x336   :  { %532 = vmatmul.msk.f32.gmra.mxu3 %vm161_vm1, %v725_v18 }
 0x33e   :  { %533 = vmatmul.msk.f32.gmra.mxu3 %vm161_vm1, %v729_v19 }
 0x346   :  { %534 = vmatmul.msk.f32.gmra.mxu3 %vm161_vm1, %v733_v20 }
 0x3a9   :  { %v390_v13 = vpop.f32.mrf.mxu3 }
 0x3aa   :  { %v391_v17 = vadd.f32 %v390_v13, %v372_v14 }
 0x3ac   :  { %v405_v22 = vmax.f32 %v391_v17, 0.0 }
 0x3b1   :  { %v393_v21 = vpop.f32.mrf.mxu3 }
 0x3b2   :  { %v394_v15 = vadd.f32 %v393_v21, %v372_v14 }
 0x3b4   :  { %v406_v24 = vmax.f32 %v394_v15, 0.0 }
 0x3b6   :  { %v410_v16 = vpack.c.bf16 %v406_v24, %v405_v22 }
 0x3b8   :  { %539 = vmatmul.msk.bf16.vlgmr.msra.gmra.mxu0 %vm422_vm4, %v410_v16 }
 0x3b9   :  { %v396_v18 = vpop.f32.mrf.mxu3 }
 0x3ba   :  { %v397_v25 = vadd.f32 %v396_v18, %v372_v14 }
 0x3bc   :  { %v407_v27 = vmax.f32 %v397_v25, 0.0 }
 0x3c1   :  { %v399_v26 = vpop.f32.mrf.mxu3 }
 0x3c2   :  { %v400_v19 = vadd.f32 %v399_v26, %v372_v14 }
 0x3c4   :  { %v408_v28 = vmax.f32 %v400_v19, 0.0 }
 0x3c6   :  { %v411_v20 = vpack.c.bf16 %v408_v28, %v407_v27 }
 0x3c8   :  { %540 = vmatmul.msk.bf16.gmra.mxu0 %vm422_vm4, %v411_v20 }
 0x3c9   :  { %v402_v29 = vpop.f32.mrf.mxu3 }
 0x3ca   :  { %v403_v30 = vadd.f32 %v402_v29, %v372_v14 }
 0x3cc   :  { %v409_v31 = vmax.f32 %v403_v30, 0.0 }
 0x3ce   :  { %v412_v32 = vpack.c.bf16 %v409_v31, %v409_v31 }
 0x3d8   :  { %541 = vmatmul.msk.bf16.gmra.mxu0 %vm422_vm4, %v412_v32 }
 0x435   :  { %v441_v34 = vpop.f32.mrf.mxu0 }
 0x436   :  { %v442_v35 = vadd.f32 %v441_v34, %v415_v33 }
 0x438   :  { %455 = vst [vmem:[%s782_s4] sm:$0xff] %v442_v35 }
 0x43d   :  { %v443_v36 = vpop.f32.mrf.mxu0 }
 0x43e   :  { %v444_v37 = vadd.f32 %v443_v36, %v415_v33 }
 0x440   :  { %456 = vst [vmem:[%s782_s4 + $0x8] sm:$0xff] %v444_v37 }
 0x445   :  { %v446_v38 = vpop.f32.mrf.mxu0 }
 0x446   :  { %v447_v39 = vadd.f32 %v446_v38, %v415_v33 }
 0x448   :  { %457 = vst [vmem:[%s782_s4 + $0x10] sm:$0xff] %v447_v39 }
 0x44d   :  { %v448_v40 = vpop.f32.mrf.mxu0 }
 0x44e   :  { %v449_v23 = vadd.f32 %v448_v40, %v415_v33 }
 0x450   :  { %458 = vst [vmem:[%s782_s4 + $0x18] sm:$0xff] %v449_v23 }
 0x455   :  { %v451_v41 = vpop.f32.mrf.mxu0 }
 0x456   :  { %v452_v42 = vadd.f32 %v451_v41, %v415_v33 }
 0x458   :  { %459 = vst [vmem:[%s782_s4 + $0x20] sm:$0xff] %v452_v42 }
 0x45d   :  { %v453_v43 = vpop.f32.mrf.mxu0 }
 0x45e   :  { %464 = vsyncpa [#allocation3], 1 }
 0x45f   :  { %465 = vsyncpa [#allocation5], 1 }
 0x460   :  { %466 = vsyncpa [#allocation8], 1 }

</bundles_post_ra>
